<compile_context>
chip_gen: v7x
topology: tpu7x:2x2x1
jax: 0.10.0
libtpu: 0.0.40
codegen_flags: <defaults>
</compile_context>

<pallas_src>
import math
from functools import partial

import jax
import jax.numpy as jnp
from jax.experimental import pallas as pl
from jax.experimental.pallas import tpu as pltpu

POLARITY_COLUMN = 3
X_COLUMN = 1
Y_COLUMN = 2
TIMESTAMP_COLUMN = 0

LN_EPS = 1e-5
BN_EPS = 1e-5


# ---------------------------------------------------------------------------
# Tiling helper
# ---------------------------------------------------------------------------
def _pick_tile(m, tile_cols):
    """Lane tile (multiple of 128) and padded extent for a length-m lane axis."""
    m_pad = pl.cdiv(m, 128) * 128
    tile = min(max(128, (tile_cols // 128) * 128), m_pad)
    # Prefer >= 2 evenly sized grid steps when there is enough work so the
    # "parallel" axis can shard across both TensorCores (v7x megacore).
    if tile == m_pad and m_pad >= 256:
        tile = pl.cdiv(m_pad // 2, 128) * 128
    m_full = pl.cdiv(m_pad, tile) * tile
    return tile, m_full


# ---------------------------------------------------------------------------
# Kernel 1: fused Linear (+ activation) in transposed, lane-dense layout
# ---------------------------------------------------------------------------
def _dense_kernel(x_ref, w_ref, b_ref, o_ref, *, act):
    # x_ref: (F_in, TM)  samples on lanes; w_ref: (F_out, F_in); b_ref: (F_out, 1)
    y = jnp.dot(w_ref[...], x_ref[...],
                preferred_element_type=jnp.float32,
                precision=jax.lax.Precision.HIGHEST)
    y = y + b_ref[...]
    if act == "relu":
        y = jnp.maximum(y, 0.0)
    elif act == "gelu":
        y = jax.nn.gelu(y, approximate=True)
    o_ref[...] = y.astype(o_ref.dtype)


def dense_t(x_t, w, b, act=None, *, tile_cols=1024, out_dtype=jnp.float32):
    """y = act(w @ x_t + b) in transposed layout.  x_t: (F_in, M) -> (F_out, M)."""
    f_in, m = x_t.shape
    f_out = w.shape[0]
    tile, m_full = _pick_tile(m, tile_cols)
    if m_full > m:
        x_t = jnp.pad(x_t, ((0, 0), (0, m_full - m)))
    out = pl.pallas_call(
        partial(_dense_kernel, act=act),
        out_shape=jax.ShapeDtypeStruct((f_out, m_full), out_dtype),
        grid_spec=pltpu.PrefetchScalarGridSpec(
            num_scalar_prefetch=0,
            grid=(m_full // tile,),
            in_specs=[
                pl.BlockSpec((f_in, tile), lambda i: (0, i)),
                pl.BlockSpec((f_out, f_in), lambda i: (0, 0)),
                pl.BlockSpec((f_out, 1), lambda i: (0, 0)),
            ],
            out_specs=pl.BlockSpec((f_out, tile), lambda i: (0, i)),
        ),
        compiler_params=pltpu.CompilerParams(dimension_semantics=("parallel",)),
    )(x_t.astype(jnp.float32), w.astype(jnp.float32),
      b.reshape(f_out, 1).astype(jnp.float32))
    return out[:, :m]


# ---------------------------------------------------------------------------
# Kernel 2: shared Xformer attention core (LayerNorm + softmax over K + sum)
# ---------------------------------------------------------------------------
def _xformer_core_kernel(varphi_ref, psi_ref, alpha_ref, delta_ref,
                         lnw_ref, lnb_ref, o_ref, *, inv_scale, eps):
    # varphi_ref: (C, TR); psi/alpha/delta_ref: (K, C, TR); lnw/lnb: (C, 1)
    num_k = psi_ref.shape[0]
    varphi = varphi_ref[...]
    lnw = lnw_ref[...]
    lnb = lnb_ref[...]
    m = None
    denom = None
    acc = None
    for k in range(num_k):            # static unroll; K is small (e.g. 16)
        d = delta_ref[k]                                      # (C, TR)
        q = varphi - psi_ref[k] + d
        mu = jnp.mean(q, axis=0, keepdims=True)               # LayerNorm over C
        xc = q - mu
        var = jnp.mean(xc * xc, axis=0, keepdims=True)
        s = (xc * jax.lax.rsqrt(var + eps) * lnw + lnb) * inv_scale
        v = alpha_ref[k] + d
        if k == 0:                                            # online softmax init
            m = s
            denom = jnp.ones_like(s)
            acc = v
        else:
            m_new = jnp.maximum(m, s)
            rescale = jnp.exp(m - m_new)
            p = jnp.exp(s - m_new)
            denom = denom * rescale + p
            acc = acc * rescale + p * v
            m = m_new
    o_ref[...] = (acc / denom).astype(o_ref.dtype)


def xformer_core(varphi, psi_g, alpha_g, delta_kcr, ln_w, ln_b, scale,
                 *, tile_cols=512, out_dtype=jnp.float32):
    """varphi: (B,N,C); psi_g/alpha_g: (B,N,K,C); delta_kcr: (K,C,B*N) -> (B,N,C)."""
    b, n, c = varphi.shape
    k = psi_g.shape[2]
    r = b * n
    v_t = varphi.reshape(r, c).T                              # (C, R)
    psi_t = psi_g.reshape(r, k, c).transpose(1, 2, 0)         # (K, C, R)
    alpha_t = alpha_g.reshape(r, k, c).transpose(1, 2, 0)
    delta_t = delta_kcr

    tile, r_full = _pick_tile(r, tile_cols)
    pad = r_full - r
    if pad:
        v_t = jnp.pad(v_t, ((0, 0), (0, pad)))
        psi_t = jnp.pad(psi_t, ((0, 0), (0, 0), (0, pad)))
        alpha_t = jnp.pad(alpha_t, ((0, 0), (0, 0), (0, pad)))
        delta_t = jnp.pad(delta_t, ((0, 0), (0, 0), (0, pad)))

    out_t = pl.pallas_call(
        partial(_xformer_core_kernel, inv_scale=float(1.0 / scale), eps=LN_EPS),
        out_shape=jax.ShapeDtypeStruct((c, r_full), out_dtype),
        grid_spec=pltpu.PrefetchScalarGridSpec(
            num_scalar_prefetch=0,
            grid=(r_full // tile,),
            in_specs=[
                pl.BlockSpec((c, tile), lambda i: (0, i)),
                pl.BlockSpec((k, c, tile), lambda i: (0, 0, i)),
                pl.BlockSpec((k, c, tile), lambda i: (0, 0, i)),
                pl.BlockSpec((k, c, tile), lambda i: (0, 0, i)),
                pl.BlockSpec((c, 1), lambda i: (0, 0)),
                pl.BlockSpec((c, 1), lambda i: (0, 0)),
            ],
            out_specs=pl.BlockSpec((c, tile), lambda i: (0, i)),
        ),
        compiler_params=pltpu.CompilerParams(dimension_semantics=("parallel",)),
    )(v_t.astype(jnp.float32), psi_t.astype(jnp.float32),
      alpha_t.astype(jnp.float32), delta_t.astype(jnp.float32),
      ln_w.reshape(c, 1).astype(jnp.float32), ln_b.reshape(c, 1).astype(jnp.float32))
    return out_t[:, :r].T.reshape(b, n, c)


# ---------------------------------------------------------------------------
# Module pieces built from the kernels
# ---------------------------------------------------------------------------
def position_encoder(rel, p):
    """PositionEncoder (Linear -> BN(inference, folded) -> ReLU -> Linear).
    rel: (B, N, K, IN) -> delta in transposed layout (K, C, B*N)."""
    b, n, k, in_dim = rel.shape
    r = b * n
    s = p["gamma"] / jnp.sqrt(p["var"] + BN_EPS)
    w1_eff = s[:, None] * p["w1"]
    b1_eff = s * (p["b1"] - p["mean"]) + p["beta"]
    x_t = rel.reshape(r * k, in_dim).T                        # (IN, R*K)
    h_t = dense_t(x_t, w1_eff, b1_eff, act="relu")            # (IN, R*K)
    d_t = dense_t(h_t, p["w2"], p["b2"], act=None)            # (C,  R*K)
    c = p["w2"].shape[0]
    return d_t.reshape(c, r, k).transpose(2, 0, 1)            # (K, C, R)


def _transformations(features, p):
    b, n, f = features.shape
    t = dense_t(features.reshape(b * n, f).T, p["w_t"], p["b_t"])
    return t.T.reshape(b, n, -1)


def mlp_proj(x, p):
    """Final MLP projection: Linear(3C->C) -> GELU -> Linear(C->C)."""
    b, n, f_in = x.shape
    x_t = x.reshape(b * n, f_in).T
    h_t = dense_t(x_t, p["w1"], p["b1"], act="gelu")
    o_t = dense_t(h_t, p["w2"], p["b2"], act=None)
    c = p["w2"].shape[0]
    return o_t.T.reshape(b, n, c)


# --- neighbour-index machinery (plain JAX; TODO(synk): not Pallas) ---------
def _batched_index(x, idx):
    """x: (B, N, C); idx: (B, ...) int -> (B, ..., C)  (knn_gather equivalent)."""
    b, n = x.shape[:2]
    offs = (jnp.arange(b, dtype=jnp.int32) * n)[:, None]
    flat = idx.reshape(b, -1).astype(jnp.int32) + offs
    out = jnp.take(x.reshape(b * n, x.shape[-1]), flat.reshape(-1), axis=0)
    return out.reshape(idx.shape + (x.shape[-1],))


def _knn_idx(query, ref, k):
    """Indices of the k nearest `ref` points for each `query` point."""
    d = jnp.sum((query[:, :, None, :] - ref[:, None, :, :]) ** 2, axis=-1)
    _, idx = jax.lax.top_k(-d, k)
    return idx.astype(jnp.int32)


def _sample_farthest_points(x, k):
    """Deterministic FPS (start index 0), mirroring pytorch3d defaults."""
    b, n, _ = x.shape
    idx0 = jnp.zeros((b, k), jnp.int32)
    mind0 = jnp.full((b, n), jnp.inf, dtype=x.dtype)

    def body(i, state):
        idx, mind = state
        last = idx[:, i - 1]                                  # (B,)
        lastp = _batched_index(x, last[:, None])              # (B, 1, 3)
        d = jnp.sum((x - lastp) ** 2, axis=-1)                # (B, N)
        mind = jnp.minimum(mind, d)
        nxt = jnp.argmax(mind, axis=-1).astype(jnp.int32)
        idx = idx.at[:, i].set(nxt)
        return idx, mind

    idx, _ = jax.lax.fori_loop(1, k, body, (idx0, mind0))
    return idx


# --- branches ----------------------------------------------------------------
def lxformer(xytp, features, p):
    b, n, _ = xytp.shape
    c = p["ln_w"].shape[0]
    xyt = xytp[:, :, :3]
    idx = _knn_idx(xyt, xyt, p["k"])                          # TODO(synk): knn in plain JAX
    rel = xytp[:, :, None, :] - _batched_index(xytp, idx)
    delta = position_encoder(rel, p["pe"])
    t = _transformations(features, p)
    varphi, psi, alpha = t[..., :c], t[..., c:2 * c], t[..., 2 * c:]
    psi_g = _batched_index(psi, idx)
    alpha_g = _batched_index(alpha, idx)
    return xformer_core(varphi, psi_g, alpha_g, delta, p["ln_w"], p["ln_b"],
                        math.sqrt(c))


def gxformer(xytp, features, p, *, r=8):
    b, n, _ = xytp.shape
    c = p["ln_w"].shape[0]
    k = p["k"]
    xyt = xytp[:, :, :3]
    s_pts = n // r
    # TODO(synk): sample_farthest_points / knn_points are index selection; plain JAX.
    sample_idx = _sample_farthest_points(xyt, s_pts)
    sample_xyt = _batched_index(xyt, sample_idx)
    sample_xytp = _batched_index(xytp, sample_idx)
    pair_idx = _knn_idx(sample_xyt, xyt, k)
    inv_pair_idx = _knn_idx(xyt, sample_xyt, k)
    rel = xytp[:, :, None, :] - _batched_index(sample_xytp, inv_pair_idx)
    delta = position_encoder(rel, p["pe"])
    t = _transformations(features, p)
    varphi, psi, alpha = t[..., :c], t[..., c:2 * c], t[..., 2 * c:]
    psi_m = jnp.max(_batched_index(psi, pair_idx), axis=2)
    alpha_m = jnp.max(_batched_index(alpha, pair_idx), axis=2)
    psi_g = _batched_index(psi_m, inv_pair_idx)
    alpha_g = _batched_index(alpha_m, inv_pair_idx)
    return xformer_core(varphi, psi_g, alpha_g, delta, p["ln_w"], p["ln_b"],
                        math.sqrt(c))


# ---------------------------------------------------------------------------
# Pure-JAX references (natural layout) for validation
# ---------------------------------------------------------------------------
def _dense_ref(x, w, b):
    return x @ w.T + b


def _pe_ref(rel, p):
    h = rel @ p["w1"].T + p["b1"]
    s = p["gamma"] / jnp.sqrt(p["var"] + BN_EPS)
    h = (h - p["mean"]) * s + p["beta"]
    h = jnp.maximum(h, 0.0)
    return h @ p["w2"].T + p["b2"]


def _core_ref(varphi, psi_g, alpha_g, delta, w, b, scale):
    q = varphi[:, :, None, :] - psi_g + delta
    mu = jnp.mean(q, axis=-1, keepdims=True)
    var = jnp.mean((q - mu) ** 2, axis=-1, keepdims=True)
    qn = (q - mu) / jnp.sqrt(var + LN_EPS) * w + b
    a = jax.nn.softmax(qn / scale, axis=2)
    return jnp.sum(a * (alpha_g + delta), axis=2)


def lxformer_ref(xytp, features, p):
    c = p["ln_w"].shape[0]
    xyt = xytp[:, :, :3]
    idx = _knn_idx(xyt, xyt, p["k"])
    rel = xytp[:, :, None, :] - _batched_index(xytp, idx)
    delta = _pe_ref(rel, p["pe"])
    t = _dense_ref(features, p["w_t"], p["b_t"])
    varphi, psi, alpha = t[..., :c], t[..., c:2 * c], t[..., 2 * c:]
    return _core_ref(varphi, _batched_index(psi, idx), _batched_index(alpha, idx),
                     delta, p["ln_w"], p["ln_b"], math.sqrt(c))


def gxformer_ref(xytp, features, p, *, r=8):
    b, n, _ = xytp.shape
    c = p["ln_w"].shape[0]
    k = p["k"]
    xyt = xytp[:, :, :3]
    sample_idx = _sample_farthest_points(xyt, n // r)
    sample_xyt = _batched_index(xyt, sample_idx)
    sample_xytp = _batched_index(xytp, sample_idx)
    pair_idx = _knn_idx(sample_xyt, xyt, k)
    inv_pair_idx = _knn_idx(xyt, sample_xyt, k)
    rel = xytp[:, :, None, :] - _batched_index(sample_xytp, inv_pair_idx)
    delta = _pe_ref(rel, p["pe"])
    t = _dense_ref(features, p["w_t"], p["b_t"])
    varphi, psi, alpha = t[..., :c], t[..., c:2 * c], t[..., 2 * c:]
    psi_m = jnp.max(_batched_index(psi, pair_idx), axis=2)
    alpha_m = jnp.max(_batched_index(alpha, pair_idx), axis=2)
    return _core_ref(varphi, _batched_index(psi_m, inv_pair_idx),
                     _batched_index(alpha_m, inv_pair_idx),
                     delta, p["ln_w"], p["ln_b"], math.sqrt(c))


def mlp_ref(x, p):
    h = jax.nn.gelu(x @ p["w1"].T + p["b1"], approximate=True)
    return h @ p["w2"].T + p["b2"]


# ---------------------------------------------------------------------------
# Parameter construction
# ---------------------------------------------------------------------------
def _make_pe_params(key, in_dim, out_dim):
    ks = jax.random.split(key, 8)
    return dict(
        w1=0.5 * jax.random.normal(ks[0], (in_dim, in_dim), jnp.float32),
        b1=0.1 * jax.random.normal(ks[1], (in_dim,), jnp.float32),
        gamma=1.0 + 0.1 * jax.random.normal(ks[2], (in_dim,), jnp.float32),
        beta=0.1 * jax.random.normal(ks[3], (in_dim,), jnp.float32),
        mean=0.1 * jax.random.normal(ks[4], (in_dim,), jnp.float32),
        var=jax.random.uniform(ks[5], (in_dim,), jnp.float32, 0.5, 1.5),
        w2=0.3 * jax.random.normal(ks[6], (out_dim, in_dim), jnp.float32),
        b2=0.1 * jax.random.normal(ks[7], (out_dim,), jnp.float32),
    )


def _make_xformer_params(key, feat_dim, out_dim, pe_in, k):
    k1, k2, k3, k4, k5 = jax.random.split(key, 5)
    return dict(
        k=k,
        pe=_make_pe_params(k1, pe_in, out_dim),
        w_t=0.2 * jax.random.normal(k2, (out_dim * 3, feat_dim), jnp.float32),
        b_t=0.1 * jax.random.normal(k3, (out_dim * 3,), jnp.float32),
        ln_w=1.0 + 0.1 * jax.random.normal(k4, (out_dim,), jnp.float32),
        ln_b=0.1 * jax.random.normal(k5, (out_dim,), jnp.float32),
    )


# ---------------------------------------------------------------------------
if __name__ == "__main__":
    jax.config.update("jax_default_matmul_precision", "highest")

    key = jax.random.PRNGKey(0)
    kx, kt, kp, kf, kl, kg, km = jax.random.split(key, 7)

    B, N = 2, 128
    C = 32            # out_channel (== in_channel of the norms, as in the model)
    F = 32            # feature channels entering the transformations Linear
    K = 16            # k_l == k_g
    R_DOWN = 8        # GXformer down-sampling ratio r

    ts = jax.random.uniform(kt, (B, N, 1), jnp.float32)
    xy = jax.random.uniform(kx, (B, N, 2), jnp.float32)
    pol = (jax.random.uniform(kp, (B, N, 1)) > 0.5).astype(jnp.float32)
    xytp = jnp.concatenate([ts, xy, pol], axis=-1)            # cols: [t, x, y, p]
    features = 0.1 * jax.random.normal(kf, (B, N, F), jnp.float32)

    p_l = _make_xformer_params(kl, F, C, 4, K)
    p_g = _make_xformer_params(kg, F, C, 4, K)
    km1, km2, km3, km4 = jax.random.split(km, 4)
    p_mlp = dict(
        w1=0.2 * jax.random.normal(km1, (C, 3 * C), jnp.float32),
        b1=0.1 * jax.random.normal(km2, (C,), jnp.float32),
        w2=0.2 * jax.random.normal(km3, (C, C), jnp.float32),
        b2=0.1 * jax.random.normal(km4, (C,), jnp.float32),
    )

    # --- Pallas forward ----------------------------------------------------
    attn_l = lxformer(xytp, features, p_l)
    attn_g = gxformer(xytp, features, p_g, r=R_DOWN)
    # TODO(synk): SCformer needs pytorch3d.ball_query + scn.SubmanifoldConvolution;
    # no Pallas equivalent, so its slot in the concat is zero-filled purely to
    # run the projection kernel at the correct 3*C width.
    attn_sc = jnp.zeros_like(attn_l)
    attn = jnp.concatenate([attn_l, attn_sc, attn_g], axis=-1)
    out = mlp_proj(attn, p_mlp)
    out = jax.block_until_ready(out)

    # --- pure-JAX reference --------------------------------------------------
    ref_l = lxformer_ref(xytp, features, p_l)
    ref_g = gxformer_ref(xytp, features, p_g, r=R_DOWN)
    ref_out = mlp_ref(jnp.concatenate([ref_l, attn_sc, ref_g], axis=-1), p_mlp)

    assert out.shape == (B, N, C)
    for got, want, name in ((attn_l, ref_l, "LXformer"),
                            (attn_g, ref_g, "GXformer"),
                            (out, ref_out, "proj")):
        err = float(jnp.max(jnp.abs(got - want)))
        assert jnp.allclose(got, want, atol=3e-4, rtol=3e-3), (
            f"{name} mismatch vs reference, max abs err {err}")

    print("KERNEL_OK")
</pallas_src>

<mosaic_0001>
module attributes {stable_mosaic.version = 11 : i64} {
  func.func @_dense_kernel(%arg0: i32, %arg1: memref<4x1024xf32, #tpu.memory_space<vmem>>, %arg2: memref<4x4xf32, #tpu.memory_space<vmem>>, %arg3: memref<4x1xf32, #tpu.memory_space<vmem>>, %arg4: memref<4x1024xf32, #tpu.memory_space<vmem>>) attributes {dimension_semantics = [#tpu.dimension_semantics<parallel>], iteration_bounds = array<i64: 4>, scalar_prefetch = 0 : i64, scratch_operands = 0 : i64, tpu.core_type = #tpu.core_type<tc>, window_params = [{transform_indices = @transform_0, window_bounds = array<i64: 4, 1024>}, {pipeline_mode = #tpu.pipeline_mode<synchronous>, transform_indices = @transform_1, window_bounds = array<i64: 4, 4>}, {pipeline_mode = #tpu.pipeline_mode<synchronous>, transform_indices = @transform_2, window_bounds = array<i64: 4, 1>}, {transform_indices = @transform_3, window_bounds = array<i64: 4, 1024>}]} {
    %c0 = arith.constant 0 : index
    %c0_0 = arith.constant 0 : index
    %0 = vector.load %arg2[%c0, %c0_0] : memref<4x4xf32, #tpu.memory_space<vmem>>, vector<4x4xf32>
    %c0_1 = arith.constant 0 : index
    %c0_2 = arith.constant 0 : index
    %1 = vector.load %arg1[%c0_1, %c0_2] : memref<4x1024xf32, #tpu.memory_space<vmem>>, vector<4x1024xf32>
    %cst = arith.constant dense<0.000000e+00> : vector<4x1024xf32>
    %2 = tpu.matmul %0, %1, %cst {dimension_numbers = #tpu.dot_dimension_numbers<[1], [0], [0], [1], [0, 0, 1, 1], [], []>, precision = #tpu.contract_precision<fp32>} : vector<4x4xf32>, vector<4x1024xf32>, vector<4x1024xf32> -> vector<4x1024xf32>
    %c0_3 = arith.constant 0 : index
    %c0_4 = arith.constant 0 : index
    %3 = vector.load %arg3[%c0_3, %c0_4] : memref<4x1xf32, #tpu.memory_space<vmem>>, vector<4x1xf32>
    %4 = vector.broadcast %3 : vector<4x1xf32> to vector<4x1024xf32>
    %5 = arith.addf %2, %4 : vector<4x1024xf32>
    %cst_5 = arith.constant 0.000000e+00 : f32
    %6 = vector.broadcast %cst_5 : f32 to vector<4x1024xf32>
    %7 = arith.maximumf %5, %6 : vector<4x1024xf32>
    %c0_6 = arith.constant 0 : index
    %c0_7 = arith.constant 0 : index
    %8 = vector.load %arg4[%c0_6, %c0_7] : memref<4x1024xf32, #tpu.memory_space<vmem>>, vector<4x1024xf32>
    tpu.vector_store %arg4[%c0_6, %c0_7], %7 {strides = array<i32>} : memref<4x1024xf32, #tpu.memory_space<vmem>>, vector<4x1024xf32>,
    return
  }
  func.func @transform_0(%arg0: i32) -> (i32, i32) {
    %c0_i32 = arith.constant 0 : i32
    %c0_i32_0 = arith.constant 0 : i32
    return %c0_i32, %arg0 : i32, i32
  }
  func.func @transform_1(%arg0: i32) -> (i32, i32) {
    %c0_i32 = arith.constant 0 : i32
    %c0_i32_0 = arith.constant 0 : i32
    %c0_i32_1 = arith.constant 0 : i32
    return %c0_i32, %c0_i32_0 : i32, i32
  }
  func.func @transform_2(%arg0: i32) -> (i32, i32) {
    %c0_i32 = arith.constant 0 : i32
    %c0_i32_0 = arith.constant 0 : i32
    %c0_i32_1 = arith.constant 0 : i32
    return %c0_i32, %c0_i32_0 : i32, i32
  }
  func.func @transform_3(%arg0: i32) -> (i32, i32) {
    %c0_i32 = arith.constant 0 : i32
    %c0_i32_0 = arith.constant 0 : i32
    return %c0_i32, %arg0 : i32, i32
  }
}

</mosaic_0001>

<bundles_post_ra>
// kernel: tpu_custom_call.1
= control target key start
LH: loop header
LB: loop body
LE: loop exit
PB: predicated region body
PF: predicated region fallthrough
CT: control target
= control target key end

     0   :  { %8 = vsyncpa [#allocation3], 0  ;;  %s2732_s0 = inlined_call_operand.hbm [shape: f32[4,4096], index: 0, kind: input, shape index: {}]   ;;  %s2733_s1 = inlined_call_operand.vmem [shape: f32[4,4], index: 1, kind: input, shape index: {}]   ;;  %s2734_s2 = inlined_call_operand.vmem [shape: f32[4,1], index: 2, kind: input, shape index: {}]   ;;  %s2735_s3 = inlined_call_operand.hbm [shape: f32[4,4096], index: 3, kind: output, shape index: {}]  }
   0x1   :  { %10 = vsyncpa [#allocation3 + $0x1], 0 }
   0x2   :  { %11 = vsyncpa [#allocation4], 0 }
   0x3   :  { %13 = vsyncpa [#allocation4 + $0x1], 0  ;;  %s2441_s12 = smov 0   ;;  %s2443_s13 = smov 0  }
   0x4   :  { %s2445_s14 = smov 0   ;;  %s2447_s15 = smov 0  }
   0x5 LB: > { %s2462_s16 = sadd.s32 4294967295, %s2415_s15   ;;  %s2202_s17 = sadd.s32 4294967294, %s2415_s15   ;;  %s2415_s15 = sphi %s2447_s15, %s2749_s15   ;;  %s2411_s14 = sphi %s2445_s14, %s2748_s14   ;;  %s2407_s13 = sphi %s2443_s13, %s2747_s13   ;;  %s2403_s12 = sphi %s2441_s12, %s2746_s12  }
   0x6   : > { %s2466_s18 = sadd.s32 1, %s2415_s15   ;;  %s26_s19 = sadd.s32 1, %s2411_s14 }
   0x7   : > { %s23_s20 = ssub.s32 %s2415_s15, %s2466_s18  ;;  %p33_p0 = scmp.ne.s32.totalorder %s2411_s14, %s2407_s13 }
   0x8   : > { %p24_p1 = scmp.eq.s32.totalorder %s23_s20, 0  ;;  %p34_p2 = scmp.eq.s32.totalorder %s2415_s15, 0 }
   0x9   : > { %p39_p3 = scmp.ne.s32.totalorder %s2407_s13, %s2403_s12  ;;  %p40_p4 = scmp.eq.s32.totalorder %s2462_s16, 0 }
   0xa   : > { %s2478_s21 = scalar_select %p24_p1, %s2411_s14, %s26_s19  }
   0xb   : > { %p2480_p5 = por %p34_p2, %p33_p0  ;;  %p2484_p6 = por %p40_p4, %p39_p3 }
   0xc   : > { %p105_p7 = scmp.eq.s32.totalorder %s2462_s16, 3  ;;  %p111_p8 = scmp.eq.s32.totalorder %s2202_s17, 3 }
   0xd   : > { %p2278_p9 = scmp.lt.s32.totalorder %s2415_s15, 4  ;;  %s137_s26 = sand.u32 1, %s2411_s14  }
   0xe   : > { %p2490_p10 = por %p105_p7, %p33_p0  ;;  %p2494_p11 = por %p111_p8, %p39_p3 }
   0xf   : > { %s2216_s27 = sshll.u32 %s2415_s15, 9  ;;  %s2205_s28 = sshll.u32 %s137_s26, 5 }
  0x10   : > { %s2739_s24 = scalar_select %p2490_p10, 1, 0 }
  0x11   : > { %s2740_s25 = scalar_select %p2494_p11, 1, 0 }
  0x12   : > { %s2503_s4 = scalar_lea.hbm %s2732_s0, %s2216_s27  ;;  %s141_s5 = scalar_lea.vmem [#allocation2], %s2205_s28 }
  0x13   : > { %s149_s6 = sshll.u32 %s141_s5, 4  ;;  %p2507_p12 = pnand %p2278_p9, %p2480_p5  ;;  %s2511_s6 = int_to_ptr.vmem [resolvable:$true] %s149_s6 }
  0x14   : > { %s138_s8 = scalar_lea.sflag [#allocation3], %s137_s26  ;;  %s2319_s9 = scalar_lea.hbm %s2503_s4, 512 }
  0x15   : > { %p2320_p1 = scmp.ne.s32.totalorder %s2503_s4, %s2319_s9  ;;  %p2321_p2 = pneg %p2507_p12 }
  0x16   : > { %s2324_s17 = scalar_lea.hbm %s2732_s0, 2048  ;;  %p2325_p5 = scmp.lt.u32.totalorder %s2503_s4, %s2732_s0 }
  0x17   : > { %p2322_p3 = pnand %p2321_p2, %p2320_p1  ;;  %p2326_p7 = scmp.lt.u32.totalorder %s2324_s17, %s2319_s9 }
  0x18   : > { %p2328_p9 = scmp.lt.u32.totalorder %s2319_s9, %s2503_s4 }
  0x19   : > { %p2323_p4 = pneg %p2322_p3  ;;  %p2327_p8 = por %p2326_p7, %p2325_p5 }
  0x1b   : > { %p2329_p13 = por %p2328_p9, %p2327_p8 }
  0x1d   : > { %p2330_p0 = pnand %p2329_p13, %p2323_p4 }
  0x1f   : > { %2333 = shalt.err (!%p2330_p0)
}
  0x20   : > { %s2334_s22 = scalar_lea.vmem %s2511_s6, 512  ;;  %s2417_s26 = smov [#allocation2]  }
  0x21   : > { %p2335_p1 = scmp.ne.s32.totalorder %s2511_s6, %s2334_s22  ;;  %s2339_s27 = sshll.u32 %s2417_s26, 4  ;;  %s2340_s27 = int_to_ptr.vmem [resolvable:$false] %s2339_s27 }
  0x22   : > { %s2341_s28 = scalar_lea.vmem %s2340_s27, 1024  ;;  %p2342_p10 = scmp.lt.s32.totalorder %s2511_s6, %s2340_s27 }
  0x23   : > { %p2337_p3 = pnand %p2335_p1, %p2321_p2  ;;  %p2343_p5 = scmp.lt.s32.totalorder %s2341_s28, %s2334_s22 }
  0x25   : > { %p2338_p11 = pneg %p2337_p3  ;;  %p2344_p7 = por %p2343_p5, %p2342_p10 }
  0x27   : > { %p2345_p8 = pnand %p2344_p7, %p2338_p11 }
  0x29   : > { %2348 = shalt.err (!%p2345_p8)
}
  0x2a   : > { %2273 = dma.hbm_to_vmem [thread:$0]  (!%p2507_p12), %s2503_s4, 512, %s2511_s6, %s138_s8  }
  0x2b   : > { %p2742_p13 = scmp.lt.s32.totalorder %s2415_s15, 5  ;;  %p2743_p0 = scmp.ge.s32.totalorder %s2415_s15, 1 }
  0x2d   : > { %p155_p2 = pnand %p2743_p0, %p2742_p13 }
  0x2e   : > { %s2545_s29 = sand.u32 (!%p155_p2), 1, %s2407_s13  }
  0x2f   : > { %158 = sbr.rel (%p155_p2) target bundleno = 385 (0x181), region = 32  ;;  %s2209_s30 = sshll.u32 (!%p155_p2), %s2545_s29, 5 }
  0x30   : > { %s161_s5 = scalar_lea.sflag (!%p155_p2), [#allocation3], %s2545_s29  ;;  %s2551_s7 = scalar_lea.vmem (!%p155_p2), [#allocation2], %s2209_s30 }
  0x36   : > { %2394 = dma.done.wait (%p2484_p6), %s161_s5, 512  }
  0x37   : > { %2396 = vsyncadd (%p2484_p6), %s161_s5, 4294966784  ;;  %v2418_v0 = vmov 0.0   ;;  %v2419_v1 = vmov 0   ;;  %vm212_vm0 = vcmask 1043456   ;;  %vm208_vm1 = vcmask 31744   ;;  %v190_v2 = vld [vmem:[%s2551_s7] sm:$0xff] }
  0x38   : > { %295 = vmatprep.mubr.f32.mxu0 %v2418_v0  ;;  %760 = vmatprep.mubr.f32.mxu1 %v2418_v0  ;;  %v191_v3 = vld [vmem:[%s2551_s7 + $0x8] sm:$0xff]  ;;  %v189_v4 = vld [vmem:[%s2733_s1] sm:$0xf]  ;;  %v204_v5 = vcombine.high %v190_v2, %v190_v2  ;;  %v213_v7 = vsel %vm212_vm0, %v190_v2, 0  ;;  %v192_v38 = vld [vmem:[%s2551_s7 + $0x10] sm:$0xff]  ;;  %s186_s9 = scalar_lea.vmem [#allocation5], %s2209_s30 }
  0x39   : > { %2314 = vset.pattern.permute.xlu0 %v2419_v1  ;;  %v205_v6 = vcombine.high %v191_v3, %v191_v3  ;;  %v217_v8 = vsel %vm212_vm0, %v191_v3, 0  ;;  %v194_v9 = vld [vmem:[%s2734_s2] sm:$0xf]  ;;  %v2569_v10 = vand.u32 4294901760, %v213_v7  ;;  %v210_v12 = vsel %vm208_vm1, %v189_v4, 0  ;;  %v193_v39 = vld [vmem:[%s2551_s7 + $0x18] sm:$0xff] }
  0x3a   : > { %v2571_v11 = vand.u32 4294901760, %v217_v8  ;;  %197 = vperm.xlu0 %2314, %v194_v9   ;;  %v215_v13 = vsel %vm212_vm0, %v204_v5, 0  ;;  %v2575_v15 = vand.u32 4294901760, %v210_v12  ;;  %v206_v40 = vcombine.high %v192_v38, %v192_v38  ;;  %s2217_s10 = sshll.u32 %s2462_s16, 9  ;;  %s2132_s11 = sshll.u32 %s186_s9, 4  ;;  %s2691_s11 = int_to_ptr.vmem [resolvable:$true] %s2132_s11 }
  0x3b   : > { %v219_v14 = vsel %vm212_vm0, %v205_v6, 0  ;;  %v2577_v16 = vand.u32 4294901760, %v215_v13  ;;  %v314_v18 = vsub.f32 %v213_v7, %v2569_v10  ;;  %v207_v41 = vcombine.high %v193_v39, %v193_v39  ;;  %s2689_s20 = scalar_lea.hbm %s2735_s3, %s2217_s10  ;;  %s2118_s22 = scalar_lea.sflag [#allocation4], %s2545_s29 }
  0x3c   : > { %v2579_v17 = vand.u32 4294901760, %v219_v14  ;;  %v779_v19 = vsub.f32 %v217_v8, %v2571_v11  ;;  %v2584_v20 = vsub.f32 %v210_v12, %v2575_v15  ;;  %v223_v42 = vsel %vm212_vm0, %v206_v40, 0  ;;  %s2349_s26 = scalar_lea.vmem %s2691_s11, 512  ;;  %p2744_p10 = scmp.ne.s32.totalorder %s2739_s24, 0 }
  0x3d   : > { %230 = vmatprep.subr.mxu0 %v2577_v16  ;;  %v308_v21 = vsub.f32 %v215_v13, %v2577_v16  ;;  %v315_v23 = vand.u32 4294901760, %v314_v18  ;;  %v227_v43 = vsel %vm212_vm0, %v207_v41, 0  ;;  %v221_v44 = vsel %vm212_vm0, %v192_v38, 0  ;;  %p2350_p6 = scmp.ne.s32.totalorder %s2691_s11, %s2349_s26  ;;  %s2420_s16 = smov [#allocation5]  }
  0x3e   : > { %695 = vmatprep.subr.mxu1 %v2579_v17  ;;  %v773_v22 = vsub.f32 %v219_v14, %v2579_v17  ;;  %v780_v24 = vand.u32 4294901760, %v779_v19  ;;  %232 = vmatpush1.msra.mxu0 %v2569_v10  ;;  %v2593_v25 = vand.u32 4294901760, %v2584_v20  ;;  %v225_v45 = vsel %vm212_vm0, %v193_v39, 0  ;;  %s2353_s27 = sshll.u32 %s2420_s16, 4  ;;  %s2354_s27 = int_to_ptr.vmem [resolvable:$false] %s2353_s27 }
  0x3f   : > { %697 = vmatpush1.msra.mxu1 %v2571_v11  ;;  %v309_v26 = vand.u32 4294901760, %v308_v21  ;;  %v316_v28 = vsub.f32 %v314_v18, %v315_v23  ;;  %v2621_v46 = vand.u32 4294901760, %v223_v42  ;;  %v2623_v47 = vand.u32 4294901760, %v227_v43  ;;  %p2351_p11 = pnand %p2350_p6, %p2744_p10  ;;  %s2355_s28 = scalar_lea.vmem %s2354_s27, 1024 }
  0x40   : > { %v774_v27 = vand.u32 4294901760, %v773_v22  ;;  %v781_v29 = vsub.f32 %v779_v19, %v780_v24  ;;  %v299_v30 = vsub.f32 %v2584_v20, %v2593_v25  ;;  %v2627_v48 = vand.u32 4294901760, %v221_v44  ;;  %p2356_p4 = scmp.lt.s32.totalorder %s2691_s11, %s2354_s27  ;;  %p2357_p9 = scmp.lt.s32.totalorder %s2355_s28, %s2349_s26 }
  0x41   : > { %v310_v31 = vsub.f32 %v308_v21, %v309_v26  ;;  %v317_v34 = vand.u32 4294901760, %v316_v28  ;;  %v2629_v49 = vand.u32 4294901760, %v225_v45  ;;  %v1238_v50 = vsub.f32 %v223_v42, %v2621_v46  ;;  %p2352_p12 = pneg %p2351_p11 }
  0x42   : > { %v775_v32 = vsub.f32 %v773_v22, %v774_v27  ;;  %v2597_v33 = vand.u32 4294901760, %v299_v30  ;;  %v782_v35 = vand.u32 4294901760, %v781_v29  ;;  %v1703_v51 = vsub.f32 %v227_v43, %v2623_v47  ;;  %p2358_p1 = por %p2357_p9, %p2356_p4 }
  0x43   : > { %v311_v36 = vand.u32 4294901760, %v310_v31  ;;  %v1244_v52 = vsub.f32 %v221_v44, %v2627_v48  ;;  %v1709_v53 = vsub.f32 %v225_v45, %v2629_v49  ;;  %v1239_v54 = vand.u32 4294901760, %v1238_v50 }
  0x44   : > { %v776_v37 = vand.u32 4294901760, %v775_v32  ;;  %301 = vmatmul.mubr.f32.vlgmr.msra.gmra.mrb[0].mxu0 %v2597_v33  ;;  %766 = vmatmul.mubr.f32.vlgmr.msra.gmra.mrb[0].mxu1 %v2597_v33  ;;  %v1704_v55 = vand.u32 4294901760, %v1703_v51  ;;  %p2359_p3 = pnand %p2358_p1, %p2352_p12 }
  0x45   : > { %312 = vmatprep.subr.mxu0 %v311_v36  ;;  %381 = vmatprep.mubr.f32.mxu0 %v2418_v0  ;;  %v1245_v56 = vand.u32 4294901760, %v1244_v52  ;;  %v1710_v57 = vand.u32 4294901760, %v1709_v53  ;;  %v1240_v58 = vsub.f32 %v1238_v50, %v1239_v54 }
  0x46   : > { %777 = vmatprep.subr.mxu1 %v776_v37  ;;  %318 = vmatpush1.msra.mxu0 %v317_v34  ;;  %v1705_v59 = vsub.f32 %v1703_v51, %v1704_v55 }
  0x47   : > { %783 = vmatpush1.msra.mxu1 %v782_v35  ;;  %846 = vmatprep.mubr.f32.mxu1 %v2418_v0  ;;  %v1246_v60 = vsub.f32 %v1244_v52, %v1245_v56  ;;  %v1711_v61 = vsub.f32 %v1709_v53, %v1710_v57  ;;  %v1241_v62 = vand.u32 4294901760, %v1240_v58 }
  0x48   : > { %391 = vmatprep.subr.mxu0 %v308_v21  ;;  %856 = vmatprep.subr.mxu1 %v773_v22  ;;  %v1706_v63 = vand.u32 4294901760, %v1705_v59 }
  0x49   : > { %v1247_v1 = vand.u32 4294901760, %v1246_v60  ;;  %v1712_v2 = vand.u32 4294901760, %v1711_v61 }
  0x4c   : > { %383 = vmatmul.mubr.f32.vlgmr.msra.gmra.mrb[0].mxu0 %v2575_v15  ;;  %848 = vmatmul.mubr.f32.vlgmr.msra.gmra.mrb[0].mxu1 %v2575_v15 }
  0x4d   : > { %394 = vmatpush1.msra.mxu0 %v314_v18  ;;  %859 = vmatpush1.msra.mxu1 %v779_v19 }
  0x4e   : > { %457 = vmatprep.mubr.f32.mxu0 %v2418_v0  ;;  %922 = vmatprep.mubr.f32.mxu1 %v2418_v0 }
  0x4f   : > { %467 = vmatprep.subr.mxu0 %v2577_v16  ;;  %932 = vmatprep.subr.mxu1 %v2579_v17 }
  0x54   : > { %460 = vmatmul.mubr.f32.vlgmr.msra.gmra.mrb[0].mxu0 %v2584_v20  ;;  %925 = vmatmul.mubr.f32.vlgmr.msra.gmra.mrb[0].mxu1 %v2584_v20 }
  0x55   : > { %469 = vmatpush1.msra.mxu0 %v2569_v10  ;;  %934 = vmatpush1.msra.mxu1 %v2571_v11 }
  0x56   : > { %532 = vmatprep.mubr.f32.mxu0 %v2418_v0  ;;  %997 = vmatprep.mubr.f32.mxu1 %v2418_v0 }
  0x57   : > { %545 = vmatprep.subr.mxu0 %v309_v26  ;;  %1010 = vmatprep.subr.mxu1 %v774_v27 }
  0x5c   : > { %536 = vmatmul.mubr.f32.vlgmr.msra.gmra.mrb[0].mxu0 %v2593_v25  ;;  %1001 = vmatmul.mubr.f32.vlgmr.msra.gmra.mrb[0].mxu1 %v2593_v25 }
  0x5d   : > { %549 = vmatpush1.msra.mxu0 %v315_v23  ;;  %1014 = vmatpush1.msra.mxu1 %v780_v24 }
  0x5e   : > { %612 = vmatprep.mubr.f32.mxu0 %v2418_v0  ;;  %1077 = vmatprep.mubr.f32.mxu1 %v2418_v0 }
  0x5f   : > { %621 = vmatprep.subr.mxu0 %v2577_v16  ;;  %1086 = vmatprep.subr.mxu1 %v2579_v17 }
  0x64   : > { %614 = vmatmul.mubr.f32.vlgmr.msra.gmra.mrb[0].mxu0 %v2575_v15  ;;  %1079 = vmatmul.mubr.f32.vlgmr.msra.gmra.mrb[0].mxu1 %v2575_v15 }
  0x65   : > { %623 = vmatpush1.msra.mxu0 %v2569_v10  ;;  %1088 = vmatpush1.msra.mxu1 %v2571_v11 }
  0x66   : > { %686 = vmatprep.mubr.f32.mxu0 %v2418_v0  ;;  %1151 = vmatprep.mubr.f32.mxu1 %v2418_v0 }
  0x67   : > { %1160 = vmatprep.subr.mxu0 %v2621_v46  ;;  %1625 = vmatprep.subr.mxu1 %v2623_v47 }
  0x6c   : > { %688 = vmatmul.mubr.f32.vlgmr.msra.gmra.mrb[0].mxu0 %v2575_v15  ;;  %1153 = vmatmul.mubr.f32.vlgmr.msra.gmra.mrb[0].mxu1 %v2575_v15 }
  0x6d   : > { %1162 = vmatpush1.msra.mxu0 %v2627_v48  ;;  %1225 = vmatprep.mubr.f32.mxu0 %v2418_v0 }
  0x6e   : > { %1627 = vmatpush1.msra.mxu1 %v2629_v49  ;;  %1690 = vmatprep.mubr.f32.mxu1 %v2418_v0 }
  0x6f   : > { %1242 = vmatprep.subr.mxu0 %v1241_v62  ;;  %1707 = vmatprep.subr.mxu1 %v1706_v63 }
  0x70   : > { %1231 = vmatmul.mubr.f32.vlgmr.msra.gmra.mrb[2].mxu0 %v2597_v33  ;;  %1696 = vmatmul.mubr.f32.vlgmr.msra.gmra.mrb[2].mxu1 %v2597_v33 }
  0x71   : > { %1248 = vmatpush1.msra.mxu0 %v1247_v1  ;;  %1713 = vmatpush1.msra.mxu1 %v1712_v2 }
  0x72   : > { %1311 = vmatprep.mubr.f32.mxu0 %v2418_v0  ;;  %1776 = vmatprep.mubr.f32.mxu1 %v2418_v0 }
  0x73   : > { %1321 = vmatprep.subr.mxu0 %v1238_v50  ;;  %1786 = vmatprep.subr.mxu1 %v1703_v51 }
  0x78   : > { %1313 = vmatmul.mubr.f32.vlgmr.msra.gmra.mrb[2].mxu0 %v2575_v15  ;;  %1778 = vmatmul.mubr.f32.vlgmr.msra.gmra.mrb[2].mxu1 %v2575_v15 }
  0x79   : > { %1324 = vmatpush1.msra.mxu0 %v1244_v52  ;;  %1789 = vmatpush1.msra.mxu1 %v1709_v53 }
  0x7a   : > { %1387 = vmatprep.mubr.f32.mxu0 %v2418_v0  ;;  %1852 = vmatprep.mubr.f32.mxu1 %v2418_v0 }
  0x7b   : > { %1397 = vmatprep.subr.mxu0 %v2621_v46  ;;  %1862 = vmatprep.subr.mxu1 %v2623_v47 }
  0x80   : > { %1390 = vmatmul.mubr.f32.vlgmr.msra.gmra.mrb[2].mxu0 %v2584_v20  ;;  %1855 = vmatmul.mubr.f32.vlgmr.msra.gmra.mrb[2].mxu1 %v2584_v20 }
  0x81   : > { %1399 = vmatpush1.msra.mxu0 %v2627_v48  ;;  %1864 = vmatpush1.msra.mxu1 %v2629_v49 }
  0x82   : > { %1462 = vmatprep.mubr.f32.mxu0 %v2418_v0  ;;  %1927 = vmatprep.mubr.f32.mxu1 %v2418_v0 }
  0x83   : > { %1475 = vmatprep.subr.mxu0 %v1239_v54  ;;  %1940 = vmatprep.subr.mxu1 %v1704_v55 }
  0x88   : > { %1466 = vmatmul.mubr.f32.vlgmr.msra.gmra.mrb[2].mxu0 %v2593_v25  ;;  %1931 = vmatmul.mubr.f32.vlgmr.msra.gmra.mrb[2].mxu1 %v2593_v25 }
  0x89   : > { %1479 = vmatpush1.msra.mxu0 %v1245_v56  ;;  %1944 = vmatpush1.msra.mxu1 %v1710_v57 }
  0x8a   : > { %1542 = vmatprep.mubr.f32.mxu0 %v2418_v0  ;;  %2007 = vmatprep.mubr.f32.mxu1 %v2418_v0 }
  0x8b   : > { %1551 = vmatprep.subr.mxu0 %v2621_v46  ;;  %2016 = vmatprep.subr.mxu1 %v2623_v47 }
  0x90   : > { %1544 = vmatmul.mubr.f32.vlgmr.msra.gmra.mrb[2].mxu0 %v2575_v15  ;;  %2009 = vmatmul.mubr.f32.vlgmr.msra.gmra.mrb[2].mxu1 %v2575_v15 }
  0x91   : > { %1553 = vmatpush1.msra.mxu0 %v2627_v48  ;;  %2018 = vmatpush1.msra.mxu1 %v2629_v49 }
  0x92   : > { %1616 = vmatprep.mubr.f32.mxu0 %v2418_v0  ;;  %2081 = vmatprep.mubr.f32.mxu1 %v2418_v0 }
  0x98   : > { %1618 = vmatmul.mubr.f32.vlgmr.msra.gmra.mrb[2].mxu0 %v2575_v15  ;;  %2083 = vmatmul.mubr.f32.vlgmr.msra.gmra.mrb[2].mxu1 %v2575_v15 }
  0xb9   : > { %v198_v3 = vpop.permute.xlu0 %197 }
 0x13f   : > { %v689_v4 = vpop.f32.mrb[0].mxu0  ;;  %v1154_v5 = vpop.f32.mrb[0].mxu1 }
 0x140   : > { %v2218_v6 = vadd.f32 %v689_v4, %v198_v3  ;;  %v2220_v7 = vadd.f32 %v1154_v5, %v198_v3  ;;  %v691_v8 = vpop.f32.mrb[1].mxu0  ;;  %v1156_v9 = vpop.f32.mrb[1].mxu1 }
 0x141   : > { %v2219_v10 = vadd.f32 %v691_v8, %v198_v3  ;;  %v2221_v11 = vadd.f32 %v1156_v9, %v198_v3 }
 0x142   : > { %v2089_v12 = vmax.f32 %v2218_v6, 0.0  ;;  %v2091_v13 = vmax.f32 %v2220_v7, 0.0 }
 0x143   : > { %v2090_v14 = vmax.f32 %v2219_v10, 0.0  ;;  %v2092_v16 = vmax.f32 %v2221_v11, 0.0 }
 0x145   : > { %v2105_v0 = vcombine.low %v2089_v12, %v2090_v14  ;;  %v2106_v17 = vcombine.low %v2091_v13, %v2092_v16 }
 0x147   : > { %2113 = vst [vmem:[%s186_s9] sm:$0xff] %v2105_v0  ;;  %2114 = vst [vmem:[%s186_s9 + $0x8] sm:$0xff] %v2106_v17 }
 0x16b   : > { %v1619_v15 = vpop.f32.mrb[2].mxu0  ;;  %v2084_v18 = vpop.f32.mrb[2].mxu1 }
 0x16c   : > { %v2222_v19 = vadd.f32 %v1619_v15, %v198_v3  ;;  %v2224_v20 = vadd.f32 %v2084_v18, %v198_v3  ;;  %v1621_v21 = vpop.f32.mrb[3].mxu0  ;;  %v2086_v22 = vpop.f32.mrb[3].mxu1 }
 0x16d   : > { %v2223_v23 = vadd.f32 %v1621_v21, %v198_v3  ;;  %v2225_v24 = vadd.f32 %v2086_v22, %v198_v3 }
 0x16e   : > { %v2093_v25 = vmax.f32 %v2222_v19, 0.0  ;;  %v2095_v26 = vmax.f32 %v2224_v20, 0.0 }
 0x16f   : > { %v2094_v27 = vmax.f32 %v2223_v23, 0.0  ;;  %v2096_v28 = vmax.f32 %v2225_v24, 0.0 }
 0x171   : > { %v2107_v29 = vcombine.low %v2093_v25, %v2094_v27  ;;  %v2108_v30 = vcombine.low %v2095_v26, %v2096_v28 }
 0x173   : > { %2115 = vst [vmem:[%s186_s9 + $0x10] sm:$0xff] %v2107_v29  ;;  %2116 = vst [vmem:[%s186_s9 + $0x18] sm:$0xff] %v2108_v30 }
 0x174   : > { %2362 = shalt.err (!%p2359_p3)
}
 0x175   : > { %s2363_s29 = scalar_lea.hbm %s2689_s20, 512  ;;  %s2367_s7 = scalar_lea.hbm %s2735_s3, 2048 }
 0x176   : > { %p2364_p5 = scmp.ne.s32.totalorder %s2689_s20, %s2363_s29  ;;  %p2368_p13 = scmp.lt.u32.totalorder %s2689_s20, %s2735_s3 }
 0x177   : > { %p2369_p0 = scmp.lt.u32.totalorder %s2367_s7, %s2363_s29  ;;  %p2371_p6 = scmp.lt.u32.totalorder %s2363_s29, %s2689_s20 }
 0x178   : > { %p2365_p7 = pnand %p2364_p5, %p2744_p10 }
 0x179   : > { %p2370_p2 = por %p2369_p0, %p2368_p13 }
 0x17a   : > { %p2366_p8 = pneg %p2365_p7 }
 0x17b   : > { %p2372_p11 = por %p2371_p6, %p2370_p2 }
 0x17d   : > { %p2373_p12 = pnand %p2372_p11, %p2366_p8 }
 0x17f   : > { %2376 = shalt.err (!%p2373_p12)
}
 0x180   : > { %2268 = dma.vmem_to_hbm [thread:$0]  (%p2744_p10), %s2691_s11, 512, %s2689_s20, %s2118_s22  }
 0x181 PF: > { %p2279_p4 = scmp.ge.s32.totalorder %s2415_s15, 2  ;;  %s2144_s23 = sand.u32 1, %s2403_s12  }
 0x182   : > { %p2745_p9 = scmp.ne.s32.totalorder %s2740_s25, 0  ;;  %s2145_s8 = scalar_lea.sflag [#allocation4], %s2144_s23 }
 0x184   : > { %p2275_p1 = pnand %p2279_p4, %p2745_p9 }
 0x186   : > { %2398 = dma.done.wait (!%p2275_p1), %s2145_s8, 512  }
 0x187   : > { %2400 = vsyncadd (!%p2275_p1), %s2145_s8, 4294966784  ;;  %p16_p3 = scmp.ge.s32.totalorder %s2466_s18, 6   ;;  %s2746_s12 = smov %s2407_s13 }
 0x188   : > { %s2747_s13 = smov %s2411_s14  ;;  %s2748_s14 = smov %s2478_s21 }
 0x189   : > { %s2749_s15 = smov %s2466_s18  ;;  %18 = sbr.rel (!%p16_p3) target bundleno = 5 (0x5), region = 77 }
 0x190   :  { %2150 = vsyncpa [#allocation3], 1 }
 0x191   :  { %2152 = vsyncpa [#allocation3 + $0x1], 1 }
 0x192   :  { %2153 = vsyncpa [#allocation4], 1 }
 0x193   :  { %2155 = vsyncpa [#allocation4 + $0x1], 1 }

</bundles_post_ra>
